<compile_context>
chip_gen: v6e
topology: v6e:2x2x1
jax: 0.10.0
libtpu: 0.0.40
codegen_flags: <defaults>
</compile_context>

<pallas_src>
import jax
import jax.numpy as jnp
from jax.experimental import pallas as pl
from jax.experimental.pallas import tpu as pltpu

_LANE = 128
_SUBLANE = 8


def _round_up(x, m):
    return ((x + m - 1) // m) * m


def _choose_row_tile(n_rows, bytes_per_row, *, max_tile=1024, budget=16 << 20):
    """Large, sublane-aligned row tile, double-buffer-sized under a VMEM budget,
    capped so the (parallel) grid keeps >= 2 steps when possible (v7x megacore)."""
    cap = max(_SUBLANE,
              (budget // (2 * max(bytes_per_row, 1))) // _SUBLANE * _SUBLANE)
    tile = min(max_tile, cap)
    half = _round_up(pl.cdiv(n_rows, 2), _SUBLANE)
    return max(_SUBLANE, min(tile, half))


# ----------------------------- kernels --------------------------------------

def _rgcn_jk_kernel(h_ref, bias_ref, h_input_ref, repr_prev_ref,
                    h_out_ref, h_input_out_ref, repr_out_ref):
    """One fused pass over a row tile: bias + ReLU + JK residual + JK concat."""
    h = h_ref[...].astype(jnp.float32) + bias_ref[...].astype(jnp.float32)
    h = jnp.maximum(h, 0.0)                                   # activation = ReLU
    h_out_ref[...] = h.astype(h_out_ref.dtype)
    h_input_out_ref[...] = (
        h_input_ref[...].astype(jnp.float32) + h).astype(h_input_out_ref.dtype)
    # Fused JK concat: repr_new[:, :R] = prev_repr ; repr_new[:, R:] = h_new
    R = repr_prev_ref.shape[1]
    repr_out_ref[:, :R] = repr_prev_ref[...].astype(repr_out_ref.dtype)
    repr_out_ref[:, R:] = h.astype(repr_out_ref.dtype)


def _rgcn_bias_act_kernel(h_ref, bias_ref, h_out_ref):
    """Slim input-layer / no-JK variant: only h_new = relu(h + bias)."""
    h = h_ref[...].astype(jnp.float32) + bias_ref[...].astype(jnp.float32)
    h_out_ref[...] = jnp.maximum(h, 0.0).astype(h_out_ref.dtype)


# ----------------------------- wrappers --------------------------------------

def _jk_forward(h, bias2d, prev_h_input, prev_repr):
    N, D = h.shape
    R = prev_repr.shape[1]
    dt = h.dtype
    itemsize = h.dtype.itemsize
    # reads: h, prev_h_input, prev_repr ; writes: h_new, h_input_new, repr_new
    bytes_per_row = itemsize * (2 * D + R + 2 * D + (R + D))
    tile = _choose_row_tile(N, bytes_per_row)
    n_pad = _round_up(N, tile)
    if n_pad != N:
        pad = ((0, n_pad - N), (0, 0))
        h = jnp.pad(h, pad)
        prev_h_input = jnp.pad(prev_h_input, pad)
        prev_repr = jnp.pad(prev_repr, pad)

    h_new, h_input_new, repr_new = pl.pallas_call(
        _rgcn_jk_kernel,
        out_shape=(
            jax.ShapeDtypeStruct((n_pad, D), dt),        # h_new
            jax.ShapeDtypeStruct((n_pad, D), dt),        # h_input_new
            jax.ShapeDtypeStruct((n_pad, R + D), dt),    # repr_new (fused concat)
        ),
        grid_spec=pltpu.PrefetchScalarGridSpec(
            num_scalar_prefetch=0,
            grid=(n_pad // tile,),
            in_specs=[
                pl.BlockSpec((tile, D), lambda i: (i, 0)),      # h
                pl.BlockSpec((1, D), lambda i: (0, 0)),         # bias
                pl.BlockSpec((tile, D), lambda i: (i, 0)),      # prev h_input
                pl.BlockSpec((tile, R), lambda i: (i, 0)),      # prev repr
            ],
            out_specs=[
                pl.BlockSpec((tile, D), lambda i: (i, 0)),      # h_new
                pl.BlockSpec((tile, D), lambda i: (i, 0)),      # h_input_new
                pl.BlockSpec((tile, R + D), lambda i: (i, 0)),  # repr_new
            ],
        ),
        input_output_aliases={2: 1},   # donate prev_h_input buffer -> h_input_new
        compiler_params=pltpu.CompilerParams(
            dimension_semantics=("parallel",)),
    )(h, bias2d, prev_h_input, prev_repr)

    if n_pad != N:
        h_new, h_input_new, repr_new = h_new[:N], h_input_new[:N], repr_new[:N]
    return h_new, h_input_new, repr_new


def _bias_act_call(h, bias2d):
    n_rows, width = h.shape
    dt = h.dtype
    bytes_per_row = h.dtype.itemsize * 2 * width            # one read + one write
    tile = _choose_row_tile(n_rows, bytes_per_row)
    n_pad = _round_up(n_rows, tile)
    hp = jnp.pad(h, ((0, n_pad - n_rows), (0, 0))) if n_pad != n_rows else h
    out = pl.pallas_call(
        _rgcn_bias_act_kernel,
        out_shape=jax.ShapeDtypeStruct((n_pad, width), dt),
        grid_spec=pltpu.PrefetchScalarGridSpec(
            num_scalar_prefetch=0,
            grid=(n_pad // tile,),
            in_specs=[
                pl.BlockSpec((tile, width), lambda i: (i, 0)),
                pl.BlockSpec((1, width), lambda i: (0, 0)),
            ],
            out_specs=pl.BlockSpec((tile, width), lambda i: (i, 0)),
        ),
        compiler_params=pltpu.CompilerParams(
            dimension_semantics=("parallel",)),
    )(hp, bias2d)
    return out[:n_rows] if n_pad != n_rows else out


def _bias_act_forward(h, bias2d):
    N, D = h.shape
    if D < _LANE and _LANE % D == 0:
        # Lane-dense repack: (N, D) -> (N*D/128, 128) via zero-copy row-major
        # reshape; bias is tiled across the 128 lanes to match.
        pack = _LANE // D
        n_pad = _round_up(N, pack)
        hp = jnp.pad(h, ((0, n_pad - N), (0, 0))) if n_pad != N else h
        hv = hp.reshape(n_pad // pack, _LANE)
        bv = jnp.tile(bias2d, (1, pack))
        out = _bias_act_call(hv, bv).reshape(n_pad, D)
        return out[:N] if n_pad != N else out
    return _bias_act_call(h, bias2d)


def rgcn_layer_forward(h, bias, prev_repr, prev_h_input, *,
                       is_input_layer=False, no_jk=False):
    """Pallas implementation of RGCNLayer.forward (post-propagate part).

    Args:
      h:            (N, D) node representations (g.ndata['h'] after propagate).
      bias:         (D,) bias parameter or None.
      prev_repr:    (N, R) previous jumping-knowledge repr.
      prev_h_input: (N, D) previous h_input.
    Returns:
      (h_new, repr_new, h_input_new)
    """
    N, D = h.shape
    dt = h.dtype
    if bias is None:
        bias2d = jnp.zeros((1, D), dt)
    else:
        bias2d = jnp.asarray(bias, dt).reshape(1, D)

    if is_input_layer or no_jk:
        h_new = _bias_act_forward(h, bias2d)
        return h_new, h_new, h_new

    h_new, h_input_new, repr_new = _jk_forward(h, bias2d, prev_h_input, prev_repr)
    return h_new, repr_new, h_input_new


# ----------------------------- reference / demo ------------------------------

def _reference(h, bias, prev_repr, prev_h_input, is_input_layer=False, no_jk=False):
    node_repr = jnp.maximum(h + bias[None, :], 0.0)
    if is_input_layer or no_jk:
        return node_repr, node_repr, node_repr
    return (node_repr,
            jnp.concatenate([prev_repr, node_repr], axis=1),
            prev_h_input + node_repr)


if __name__ == "__main__":
    key = jax.random.PRNGKey(0)
    N, out_dim, prev_R = 64, 32, 64

    k1, k2, k3, k4 = jax.random.split(key, 4)
    h = jax.random.normal(k1, (N, out_dim), jnp.float32)
    bias = jax.random.uniform(k2, (out_dim,), jnp.float32, -0.1, 0.1)
    prev_repr = jax.random.normal(k3, (N, prev_R), jnp.float32)
    prev_h_input = jax.random.normal(k4, (N, out_dim), jnp.float32)

    fwd = jax.jit(rgcn_layer_forward, static_argnames=("is_input_layer", "no_jk"))

    # --- JK path (fused concat + residual, aliased h_input) ---
    h_new, repr_new, h_input_new = fwd(h, bias, prev_repr, prev_h_input)
    jax.block_until_ready((h_new, repr_new, h_input_new))
    h_ref, repr_ref, h_in_ref = _reference(h, bias, prev_repr, prev_h_input)
    assert jnp.allclose(h_new, h_ref, atol=1e-6)
    assert jnp.allclose(repr_new, repr_ref, atol=1e-6)
    assert jnp.allclose(h_input_new, h_in_ref, atol=1e-6)

    # --- input-layer / no_jk branch (slim lane-dense kernel) ---
    h2, r2, hi2 = fwd(h, bias, prev_repr, prev_h_input, is_input_layer=True)
    jax.block_until_ready((h2, r2, hi2))
    assert jnp.allclose(h2, h_ref, atol=1e-6)
    assert jnp.allclose(r2, h_ref, atol=1e-6)
    assert jnp.allclose(hi2, h_ref, atol=1e-6)

    # --- ragged node count exercises the padded / cdiv path ---
    Nr = 50
    h3, pr3, pi3 = h[:Nr], prev_repr[:Nr], prev_h_input[:Nr]
    h3n, r3n, hi3n = fwd(h3, bias, pr3, pi3)
    jax.block_until_ready((h3n, r3n, hi3n))
    h3r, r3r, hi3r = _reference(h3, bias, pr3, pi3)
    assert jnp.allclose(h3n, h3r, atol=1e-6)
    assert jnp.allclose(r3n, r3r, atol=1e-6)
    assert jnp.allclose(hi3n, hi3r, atol=1e-6)

    print("KERNEL_OK")
</pallas_src>

<mosaic_0001>
module attributes {stable_mosaic.version = 11 : i64} {
  func.func @_rgcn_jk_kernel(%arg0: i32, %arg1: memref<32x32xf32, #tpu.memory_space<vmem>>, %arg2: memref<1x32xf32, #tpu.memory_space<vmem>>, %arg3: memref<32x32xf32, #tpu.memory_space<vmem>>, %arg4: memref<32x64xf32, #tpu.memory_space<vmem>>, %arg5: memref<32x32xf32, #tpu.memory_space<vmem>>, %arg6: memref<32x32xf32, #tpu.memory_space<vmem>>, %arg7: memref<32x96xf32, #tpu.memory_space<vmem>>) attributes {dimension_semantics = [#tpu.dimension_semantics<parallel>], iteration_bounds = array<i64: 2>, scalar_prefetch = 0 : i64, scratch_operands = 0 : i64, tpu.core_type = #tpu.core_type<tc>, window_params = [{transform_indices = @transform_0, window_bounds = array<i64: 32, 32>}, {pipeline_mode = #tpu.pipeline_mode<synchronous>, transform_indices = @transform_1, window_bounds = array<i64: 1, 32>}, {transform_indices = @transform_2, window_bounds = array<i64: 32, 32>}, {transform_indices = @transform_3, window_bounds = array<i64: 32, 64>}, {transform_indices = @transform_4, window_bounds = array<i64: 32, 32>}, {transform_indices = @transform_5, window_bounds = array<i64: 32, 32>}, {transform_indices = @transform_6, window_bounds = array<i64: 32, 96>}]} {
    %c0 = arith.constant 0 : index
    %c0_0 = arith.constant 0 : index
    %0 = vector.load %arg1[%c0, %c0_0] : memref<32x32xf32, #tpu.memory_space<vmem>>, vector<32x32xf32>
    %c0_1 = arith.constant 0 : index
    %c0_2 = arith.constant 0 : index
    %1 = vector.load %arg2[%c0_1, %c0_2] : memref<1x32xf32, #tpu.memory_space<vmem>>, vector<1x32xf32>
    %2 = vector.broadcast %1 : vector<1x32xf32> to vector<32x32xf32>
    %3 = arith.addf %0, %2 : vector<32x32xf32>
    %cst = arith.constant 0.000000e+00 : f32
    %4 = vector.broadcast %cst : f32 to vector<32x32xf32>
    %5 = arith.maximumf %3, %4 : vector<32x32xf32>
    %c0_3 = arith.constant 0 : index
    %c0_4 = arith.constant 0 : index
    %6 = vector.load %arg5[%c0_3, %c0_4] : memref<32x32xf32, #tpu.memory_space<vmem>>, vector<32x32xf32>
    tpu.vector_store %arg5[%c0_3, %c0_4], %5 {strides = array<i32>} : memref<32x32xf32, #tpu.memory_space<vmem>>, vector<32x32xf32>,
    %c0_5 = arith.constant 0 : index
    %c0_6 = arith.constant 0 : index
    %7 = vector.load %arg3[%c0_5, %c0_6] : memref<32x32xf32, #tpu.memory_space<vmem>>, vector<32x32xf32>
    %8 = arith.addf %7, %5 : vector<32x32xf32>
    %c0_7 = arith.constant 0 : index
    %c0_8 = arith.constant 0 : index
    %9 = vector.load %arg6[%c0_7, %c0_8] : memref<32x32xf32, #tpu.memory_space<vmem>>, vector<32x32xf32>
    tpu.vector_store %arg6[%c0_7, %c0_8], %8 {strides = array<i32>} : memref<32x32xf32, #tpu.memory_space<vmem>>, vector<32x32xf32>,
    %c0_9 = arith.constant 0 : index
    %c0_10 = arith.constant 0 : index
    %10 = vector.load %arg4[%c0_9, %c0_10] : memref<32x64xf32, #tpu.memory_space<vmem>>, vector<32x64xf32>
    %c0_11 = arith.constant 0 : index
    %c0_12 = arith.constant 0 : index
    %11 = vector.load %arg7[%c0_11, %c0_12] : memref<32x96xf32, #tpu.memory_space<vmem>>, vector<32x64xf32>
    tpu.vector_store %arg7[%c0_11, %c0_12], %10 {strides = array<i32>} : memref<32x96xf32, #tpu.memory_space<vmem>>, vector<32x64xf32>,
    %c0_13 = arith.constant 0 : index
    %c64 = arith.constant 64 : index
    %12 = vector.load %arg7[%c0_13, %c64] : memref<32x96xf32, #tpu.memory_space<vmem>>, vector<32x32xf32>
    tpu.vector_store %arg7[%c0_13, %c64], %5 {strides = array<i32>} : memref<32x96xf32, #tpu.memory_space<vmem>>, vector<32x32xf32>,
    return
  }
  func.func @transform_0(%arg0: i32) -> (i32, i32) {
    %c0_i32 = arith.constant 0 : i32
    %c0_i32_0 = arith.constant 0 : i32
    return %arg0, %c0_i32 : i32, i32
  }
  func.func @transform_1(%arg0: i32) -> (i32, i32) {
    %c0_i32 = arith.constant 0 : i32
    %c0_i32_0 = arith.constant 0 : i32
    %c0_i32_1 = arith.constant 0 : i32
    return %c0_i32, %c0_i32_0 : i32, i32
  }
  func.func @transform_2(%arg0: i32) -> (i32, i32) {
    %c0_i32 = arith.constant 0 : i32
    %c0_i32_0 = arith.constant 0 : i32
    return %arg0, %c0_i32 : i32, i32
  }
  func.func @transform_3(%arg0: i32) -> (i32, i32) {
    %c0_i32 = arith.constant 0 : i32
    %c0_i32_0 = arith.constant 0 : i32
    return %arg0, %c0_i32 : i32, i32
  }
  func.func @transform_4(%arg0: i32) -> (i32, i32) {
    %c0_i32 = arith.constant 0 : i32
    %c0_i32_0 = arith.constant 0 : i32
    return %arg0, %c0_i32 : i32, i32
  }
  func.func @transform_5(%arg0: i32) -> (i32, i32) {
    %c0_i32 = arith.constant 0 : i32
    %c0_i32_0 = arith.constant 0 : i32
    return %arg0, %c0_i32 : i32, i32
  }
  func.func @transform_6(%arg0: i32) -> (i32, i32) {
    %c0_i32 = arith.constant 0 : i32
    %c0_i32_0 = arith.constant 0 : i32
    return %arg0, %c0_i32 : i32, i32
  }
}

</mosaic_0001>

<bundles_post_ra>
// kernel: rgcn_layer_forward.1
= control target key start
LH: loop header
LB: loop body
LE: loop exit
PB: predicated region body
PF: predicated region fallthrough
CT: control target
= control target key end

     0   :  { %12 = vsyncpa [#allocation3], 0  ;;  %s872_s0 = inlined_call_operand.vmem [shape: f32[64,32], index: 0, kind: input, shape index: {}]   ;;  %s873_s1 = inlined_call_operand.vmem [shape: f32[1,32], index: 1, kind: input, shape index: {}]   ;;  %s874_s2 = inlined_call_operand.vmem [shape: f32[64,32], index: 2, kind: input, shape index: {}, may-alias: {2,5}]   ;;  %s875_s3 = inlined_call_operand.vmem [shape: f32[64,64], index: 3, kind: input, shape index: {}]   ;;  %s876_s4 = inlined_call_operand.vmem [shape: f32[64,32], index: 4, kind: output, shape index: {0}]   ;;  %s877_s5 = inlined_call_operand.vmem [shape: f32[64,32], index: 5, kind: output, shape index: {1}, may-alias: {2,5}]   ;;  %s878_s6 = inlined_call_operand.hbm [shape: f32[64,96], index: 6, kind: output, shape index: {2}]  }
   0x1   :  { %14 = vsyncpa [#allocation3 + $0x1], 0  ;;  %s723_s21 = smov 0   ;;  %s725_s22 = smov 0  }
   0x2   :  { %s727_s23 = smov 0   ;;  %s729_s24 = smov 0  }
   0x3 LB: > { %s744_s25 = sadd.s32 4294967295, %s682_s24   ;;  %s558_s26 = sadd.s32 4294967294, %s682_s24   ;;  %s682_s24 = sphi %s729_s24, %s884_s24   ;;  %s678_s23 = sphi %s727_s23, %s883_s23   ;;  %s674_s22 = sphi %s725_s22, %s882_s22   ;;  %s670_s21 = sphi %s723_s21, %s881_s21  }
   0x4   : > { %s748_s27 = sadd.s32 1, %s682_s24   ;;  %s178_s28 = sadd.s32 1, %s678_s23 }
   0x5   : > { %s175_s29 = ssub.s32 %s682_s24, %s748_s27  ;;  %p188_p0 = scmp.ne.s32.totalorder %s678_s23, %s674_s22 }
   0x6   : > { %p176_p1 = scmp.eq.s32.totalorder %s175_s29, 0  ;;  %p189_p2 = scmp.eq.s32.totalorder %s744_s25, 1 }
   0x7   : > { %p194_p3 = scmp.ne.s32.totalorder %s674_s22, %s670_s21  ;;  %p195_p4 = scmp.eq.s32.totalorder %s558_s26, 1 }
   0x8   : > { %s759_s30 = scalar_select %p176_p1, %s678_s23, %s178_s28  }
   0x9   : > { %p761_p5 = por %p189_p2, %p188_p0  ;;  %p765_p6 = por %p195_p4, %p194_p3 }
   0xa   : > { %p561_p7 = scmp.ge.s32.totalorder %s682_s24, 1  ;;  %p243_p8 = scmp.lt.s32.totalorder %s682_s24, 3 }
   0xc   : > { %p244_p9 = pnand %p561_p7, %p243_p8 }
   0xd   : > { %s563_s9 = sshll.u32 (!%p244_p9), %s744_s25, 2  ;;  %s290_s10 = sand.u32 (!%p244_p9), 1, %s674_s22  }
   0xe   : > { %247 = sbr.rel (%p244_p9) target bundleno = 160 (0xa0), region = 36  ;;  %p294_p10 = scmp.lt.s32.totalorder (!%p244_p9), %s563_s9, 7 }
   0xf   : > { %s562_s11 = sshll.u32 (!%p244_p9), %s290_s10, 5 }
  0x10   : > { %s792_s15 = scalar_lea.vmem (!%p244_p9), [#allocation2], %s562_s11  ;;  %s684_s11 = smov (!%p244_p9), 64  }
  0x11   : > { %s422_s19 = sshll.u32 (!%p244_p9), %s792_s15, 4  ;;  %s826_s19 = int_to_ptr.vmem [resolvable:$true] %s422_s19 }
  0x13   : > { %s886_s9 = smov (!%p294_p10, %s563_s9), 7  ;;  %v573_v0 = vld [vmem:[%s873_s1] ss:$0 sm:$0xff]  ;;  %vm364_vm0 = vcmask 523264   ;;  %vm343_vm1 = vcmask 261120   ;;  %vm385_vm2 = vcmask 785920  }
  0x14   : > { %s564_s12 = sshll.u32 %s886_s9, 3  ;;  %s685_s9 = smov [#allocation2]  }
  0x15   : > { %s297_s17 = scalar_lea.vmem %s872_s0, %s564_s12  ;;  %s303_s20 = scalar_lea.vmem %s874_s2, %s564_s12 }
  0x16   : > { %v326_v1 = vld [vmem:[%s297_s17 + $0x10] sm:$0xff]  ;;  %v324_v2 = vld [vmem:[%s297_s17] sm:$0xff]  ;;  %v327_v6 = vld [vmem:[%s297_s17 + $0x18] sm:$0xff]  ;;  %s309_s29 = scalar_lea.vmem %s875_s3, %s564_s12  ;;  %s790_s14 = scalar_lea.vmem %s876_s4, %s564_s12 }
  0x17   : > { %v337_v3 = vadd.f32 %v573_v0, %v326_v1  ;;  %v350_v4 = vld [vmem:[%s303_s20 + $0x10] sm:$0xff]  ;;  %v335_v5 = vadd.f32 %v573_v0, %v324_v2  ;;  %v348_v7 = vld [vmem:[%s303_s20] sm:$0xff]  ;;  %v338_v8 = vadd.f32 %v573_v0, %v327_v6  ;;  %v325_v9 = vld [vmem:[%s297_s17 + $0x8] sm:$0xff]  ;;  %s321_s17 = scalar_lea.vmem %s877_s5, %s564_s12  ;;  %s579_s12 = sshll.u32 %s744_s25, 9 }
  0x18   : > { %v362_v10 = vld [vmem:[%s309_s29 + $0x10] sm:$0xff]  ;;  %v336_v13 = vadd.f32 %v573_v0, %v325_v9  ;;  %v360_v14 = vld [vmem:[%s309_s29] sm:$0xff]  ;;  %v363_v15 = vld [vmem:[%s309_s29 + $0x18] sm:$0xff]  ;;  %s824_s28 = scalar_lea.hbm %s878_s6, %s579_s12  ;;  %s832_s25 = scalar_lea.sflag [#allocation3], %s290_s10 }
  0x19   : > { %v341_v11 = vmax.f32 %v337_v3, 0.0  ;;  %v339_v12 = vmax.f32 %v335_v5, 0.0  ;;  %367 = vst.msk [vmem:[%s792_s15 + $0x10] sm:$0xff] %vm364_vm0, %v362_v10  ;;  %v361_v16 = vld [vmem:[%s309_s29 + $0x8] sm:$0xff]  ;;  %v351_v17 = vld [vmem:[%s303_s20 + $0x18] sm:$0xff]  ;;  %365 = vst.msk [vmem:[%s792_s15] sm:$0xff] %vm364_vm0, %v360_v14 }
  0x1a   : > { %v349_v18 = vld [vmem:[%s303_s20 + $0x8] sm:$0xff]  ;;  %368 = vst.msk [vmem:[%s792_s15 + $0x18] sm:$0xff] %vm364_vm0, %v363_v15  ;;  %366 = vst.msk [vmem:[%s792_s15 + $0x8] sm:$0xff] %vm364_vm0, %v361_v16  ;;  %v342_v20 = vmax.f32 %v338_v8, 0.0  ;;  %v340_v21 = vmax.f32 %v336_v13, 0.0  ;;  %s622_s29 = scalar_lea.vmem %s826_s19, 512 }
  0x1b   : > { %377 = vrot.lane.b32.xlu1 %v341_v11, %s684_s11  ;;  %373 = vrot.lane.b32.xlu0 %v339_v12, %s684_s11  ;;  %344 = vst.msk [vmem:[%s790_s14] sm:$0xff] %vm343_vm1, %v339_v12  ;;  %v352_v19 = vadd.f32 %v348_v7, %v339_v12  ;;  %v354_v22 = vadd.f32 %v350_v4, %v341_v11  ;;  %346 = vst.msk [vmem:[%s790_s14 + $0x10] sm:$0xff] %vm343_vm1, %v341_v11  ;;  %p623_p11 = scmp.ne.s32.totalorder %s826_s19, %s622_s29  ;;  %s626_s13 = sshll.u32 %s685_s9, 4  ;;  %s627_s13 = int_to_ptr.vmem [resolvable:$false] %s626_s13 }
  0x1c   : > { %v355_v23 = vadd.f32 %v351_v17, %v342_v20  ;;  %v353_v24 = vadd.f32 %v349_v18, %v340_v21  ;;  %345 = vst.msk [vmem:[%s790_s14 + $0x8] sm:$0xff] %vm343_vm1, %v340_v21  ;;  %347 = vst.msk [vmem:[%s790_s14 + $0x18] sm:$0xff] %vm343_vm1, %v342_v20  ;;  %s628_s14 = scalar_lea.vmem %s627_s13, 1024  ;;  %p629_p0 = scmp.lt.s32.totalorder %s826_s19, %s627_s13 }
  0x1d   : > { %356 = vst.msk [vmem:[%s321_s17] sm:$0xff] %vm343_vm1, %v352_v19  ;;  %358 = vst.msk [vmem:[%s321_s17 + $0x10] sm:$0xff] %vm343_vm1, %v354_v22  ;;  %p624_p12 = pnand %p623_p11, %p761_p5  ;;  %p630_p1 = scmp.lt.s32.totalorder %s628_s14, %s622_s29 }
  0x1e   : > { %357 = vst.msk [vmem:[%s321_s17 + $0x8] sm:$0xff] %vm343_vm1, %v353_v24  ;;  %359 = vst.msk [vmem:[%s321_s17 + $0x18] sm:$0xff] %vm343_vm1, %v355_v23 }
  0x1f   : > { %379 = vrot.lane.b32.xlu1 %v342_v20, %s684_s11  ;;  %375 = vrot.lane.b32.xlu0 %v340_v21, %s684_s11  ;;  %p625_p13 = pneg %p624_p12  ;;  %p631_p2 = por %p630_p1, %p629_p0 }
  0x21   : > { %p632_p3 = pnand %p631_p2, %p625_p13 }
  0x8d   : > { %v378_v25 = vpop.permute.xlu1 %377  ;;  %v374_v26 = vpop.permute.xlu0 %373 }
  0x8e   : > { %388 = vst.msk [vmem:[%s792_s15 + $0x10] sm:$0xff] %vm385_vm2, %v378_v25  ;;  %386 = vst.msk [vmem:[%s792_s15] sm:$0xff] %vm385_vm2, %v374_v26 }
  0x91   : > { %v380_v27 = vpop.permute.xlu1 %379  ;;  %v376_v28 = vpop.permute.xlu0 %375 }
  0x92   : > { %389 = vst.msk [vmem:[%s792_s15 + $0x18] sm:$0xff] %vm385_vm2, %v380_v27  ;;  %387 = vst.msk [vmem:[%s792_s15 + $0x8] sm:$0xff] %vm385_vm2, %v376_v28 }
  0x93   : > { %635 = shalt.err (!%p632_p3)
}
  0x94   : > { %s636_s10 = scalar_lea.hbm %s824_s28, 512  ;;  %s640_s18 = scalar_lea.hbm %s878_s6, 1024 }
  0x95   : > { %p637_p4 = scmp.ne.s32.totalorder %s824_s28, %s636_s10  ;;  %p641_p9 = scmp.lt.s32.totalorder %s824_s28, %s878_s6 }
  0x96   : > { %p642_p10 = scmp.lt.s32.totalorder %s640_s18, %s636_s10 }
  0x97   : > { %p638_p7 = pnand %p637_p4, %p761_p5 }
  0x98   : > { %p643_p11 = por %p642_p10, %p641_p9 }
  0x99   : > { %p639_p8 = pneg %p638_p7 }
  0x9b   : > { %p644_p12 = pnand %p643_p11, %p639_p8 }
  0x9d   : > { %647 = shalt.err (!%p644_p12)
}
  0x9e   : > { %s686_s12 = smov 128   ;;  %s687_s20 = smov 8  }
  0x9f   : > { %580 = dma.vmem_to_hbm [thread:$0]  (%p761_p5), %s826_s19, 512, %s824_s28, %s832_s25, %s686_s12, %s686_s12, %s687_s20  }
  0xa0 PF: > { %p586_p13 = scmp.ge.s32.totalorder %s682_s24, 2  ;;  %s453_s26 = sand.u32 1, %s670_s21  }
  0xa1   : > { %s454_s29 = scalar_lea.sflag [#allocation3], %s453_s26 }
  0xa2   : > { %p583_p0 = pnand %p586_p13, %p765_p6 }
  0xa4   : > { %p584_p1 = pneg %p583_p0 }
  0xa6   : > { %665 = dma.done.wait (%p584_p1), %s454_s29, 512  }
  0xa7   : > { %667 = vsyncadd (%p584_p1), %s454_s29, 4294966784  ;;  %p17_p2 = scmp.ge.s32.totalorder %s748_s27, 4   ;;  %s881_s21 = smov %s674_s22 }
  0xa8   : > { %s882_s22 = smov %s678_s23  ;;  %s883_s23 = smov %s759_s30 }
  0xa9   : > { %s884_s24 = smov %s748_s27  ;;  %19 = sbr.rel (!%p17_p2) target bundleno = 3 (0x3), region = 101 }
  0xae   :  { %459 = vsyncpa [#allocation3], 1 }
  0xaf   :  { %461 = vsyncpa [#allocation3 + $0x1], 1 }

</bundles_post_ra>
